<compile_context>
chip_gen: v7x
topology: tpu7x:2x2x1
jax: 0.10.0
libtpu: 0.0.40
codegen_flags: <defaults>
</compile_context>

<pallas_src>
import jax
import jax.numpy as jnp
from jax.experimental import pallas as pl
from jax.experimental.pallas import tpu as pltpu


def _round_up(n: int, m: int) -> int:
    return ((n + m - 1) // m) * m


def make_sales_rnn_kernel(num_layers: int, seq_len: int, batch_p: int):
    """Builds a kernel body for fixed (num_layers, seq_len, padded batch)."""

    def kernel(*refs):
        # refs layout:
        #   x_tm, [w_ih_T, w_hh_T, bias] * num_layers, w_fc_T, b_fc, out,
        #   [acts scratch if num_layers > 1]
        x_ref = refs[0]
        idx = 1
        layer_refs = []
        for _ in range(num_layers):
            layer_refs.append(tuple(refs[idx:idx + 3]))
            idx += 3
        w_fc_ref, b_fc_ref = refs[idx], refs[idx + 1]
        out_ref = refs[idx + 2]
        acts_ref = refs[idx + 3] if num_layers > 1 else None

        src_ref = x_ref                      # (T*B_p, in_p) time-major activations
        h_last = None
        for li, (w_ih_r, w_hh_r, b_r) in enumerate(layer_refs):
            w_ih = w_ih_r[...]               # (in_p, H_p)  pre-transposed
            w_hh = w_hh_r[...]               # (H_p, H_p)   pre-transposed
            bias = b_r[...]                  # (1, H_p)     b_ih + b_hh, padded
            hidden_p = w_hh.shape[1]
            is_last = (li == num_layers - 1)

            # Hoisted input projection: one MXU matmul over all timesteps
            # (M = T*B_p instead of M = B_p per step).  Reads the whole
            # previous-layer buffer before it is overwritten below.
            xw = (jnp.dot(src_ref[...], w_ih,
                          preferred_element_type=jnp.float32)
                  + bias)                    # (T*B_p, H_p)

            h = jnp.zeros((batch_p, hidden_p), jnp.float32)
            for t in range(seq_len):         # static unroll (small, fixed T)
                off = t * batch_p            # sublane-aligned static offset
                pre = (xw[off:off + batch_p, :]
                       + jnp.dot(h, w_hh, preferred_element_type=jnp.float32))
                h = jnp.tanh(pre)
                if not is_last:
                    # Aligned (B_p, H_p) tile store into the layer buffer.
                    acts_ref[pl.ds(off, batch_p), :] = h

            if is_last:
                h_last = h                   # only the final timestep is needed
            else:
                src_ref = acts_ref           # next layer reads the scratch buffer

        logits = (jnp.dot(h_last, w_fc_ref[...],
                          preferred_element_type=jnp.float32)
                  + b_fc_ref[...])           # (B_p, O)
        out_ref[...] = jnp.maximum(logits, 0.0).astype(out_ref.dtype)

    return kernel


def sales_rnn_forward(x, rnn_params, fc_w, fc_b):
    """x: (B, T, input_size); rnn_params: list of (w_ih, w_hh, b_ih, b_hh)."""
    num_layers = len(rnn_params)
    batch, seq_len, input_size = x.shape
    hidden_size = rnn_params[0][1].shape[0]
    output_size = fc_w.shape[0]

    # Padded (vreg-aligned) sizes.
    batch_p = _round_up(batch, 8)            # sublane multiple
    hidden_p = _round_up(hidden_size, 128)   # lane multiple
    input_p = _round_up(input_size, 128)     # lane multiple

    # ---- Host-side layout plumbing (kept out of the kernel) ----
    # x: time-major, batch and feature dims zero-padded, flattened to
    # (T*B_p, in_p) so every per-t slice is a contiguous aligned tile range.
    x_tm = jnp.transpose(x.astype(jnp.float32), (1, 0, 2))      # (T, B, I)
    x_tm = jnp.pad(x_tm, ((0, 0),
                          (0, batch_p - batch),
                          (0, input_p - input_size)))
    x_flat = x_tm.reshape(seq_len * batch_p, input_p)

    flat_inputs = [x_flat]
    in_p = input_p
    for (w_ih, w_hh, b_ih, b_hh) in rnn_params:
        in_l = w_ih.shape[1]
        w_ih_t = jnp.pad(w_ih.T.astype(jnp.float32),
                         ((0, in_p - in_l), (0, hidden_p - hidden_size)))
        w_hh_t = jnp.pad(w_hh.T.astype(jnp.float32),
                         ((0, hidden_p - hidden_size),
                          (0, hidden_p - hidden_size)))
        bias = jnp.pad((b_ih + b_hh).astype(jnp.float32).reshape(1, -1),
                       ((0, 0), (0, hidden_p - hidden_size)))
        flat_inputs += [w_ih_t, w_hh_t, bias]
        in_p = hidden_p
    w_fc_t = jnp.pad(fc_w.T.astype(jnp.float32),
                     ((0, hidden_p - hidden_size), (0, 0)))
    flat_inputs += [w_fc_t, fc_b.astype(jnp.float32).reshape(1, -1)]

    # Advisory cost estimate (unpadded math) for XLA's scheduler.
    flops = 0
    in_l = input_size
    for _ in range(num_layers):
        flops += 2 * batch * seq_len * (in_l * hidden_size
                                        + hidden_size * hidden_size)
        in_l = hidden_size
    flops += 2 * batch * hidden_size * output_size
    transcendentals = batch * seq_len * num_layers * hidden_size
    bytes_accessed = (sum(int(a.size) * a.dtype.itemsize for a in flat_inputs)
                      + batch_p * output_size * 4)

    vmem_spec = pl.BlockSpec(memory_space=pltpu.MemorySpace.VMEM)
    scratch_shapes = ([pltpu.VMEM((seq_len * batch_p, hidden_p), jnp.float32)]
                      if num_layers > 1 else [])
    kernel = make_sales_rnn_kernel(num_layers, seq_len, batch_p)

    out_p = pl.pallas_call(
        kernel,
        out_shape=jax.ShapeDtypeStruct((batch_p, output_size), jnp.float32),
        in_specs=[vmem_spec] * len(flat_inputs),
        out_specs=vmem_spec,
        scratch_shapes=scratch_shapes,
        cost_estimate=pl.CostEstimate(flops=flops,
                                      transcendentals=transcendentals,
                                      bytes_accessed=bytes_accessed),
    )(*flat_inputs)

    return out_p[:batch]                      # drop padded batch rows


def sales_rnn_reference(x, rnn_params, fc_w, fc_b):
    """Pure-JAX reference mirroring the PyTorch forward."""
    layer_in = x.astype(jnp.float32)
    batch, seq_len, _ = layer_in.shape
    for (w_ih, w_hh, b_ih, b_hh) in rnn_params:
        hidden = w_hh.shape[0]
        h = jnp.zeros((batch, hidden), jnp.float32)
        outs = []
        for t in range(seq_len):
            h = jnp.tanh(layer_in[:, t, :] @ w_ih.T + b_ih + h @ w_hh.T + b_hh)
            outs.append(h)
        layer_in = jnp.stack(outs, axis=1)
    out = layer_in[:, -1, :] @ fc_w.T + fc_b
    return jnp.maximum(out, 0.0)


def init_params(key, input_size, hidden_size, output_size, num_layers):
    """Deterministic init mirroring PyTorch shapes (uniform +-1/sqrt(H))."""
    bound = 1.0 / jnp.sqrt(jnp.float32(hidden_size))
    rnn_params = []
    for layer in range(num_layers):
        in_l = input_size if layer == 0 else hidden_size
        key, k1, k2, k3, k4 = jax.random.split(key, 5)
        w_ih = jax.random.uniform(k1, (hidden_size, in_l), jnp.float32, -bound, bound)
        w_hh = jax.random.uniform(k2, (hidden_size, hidden_size), jnp.float32, -bound, bound)
        b_ih = jax.random.uniform(k3, (hidden_size,), jnp.float32, -bound, bound)
        b_hh = jax.random.uniform(k4, (hidden_size,), jnp.float32, -bound, bound)
        rnn_params.append((w_ih, w_hh, b_ih, b_hh))
    key, k5, k6 = jax.random.split(key, 3)
    fc_w = jax.random.uniform(k5, (output_size, hidden_size), jnp.float32, -bound, bound)
    fc_b = jax.random.uniform(k6, (output_size,), jnp.float32, -bound, bound)
    return rnn_params, fc_w, fc_b


if __name__ == "__main__":
    batch, seq_len = 2, 8
    input_size, hidden_size, output_size, num_layers = 4, 32, 1, 2

    key = jax.random.PRNGKey(0)
    key, kx = jax.random.split(key)
    x = jax.random.normal(kx, (batch, seq_len, input_size), jnp.float32)
    rnn_params, fc_w, fc_b = init_params(key, input_size, hidden_size,
                                         output_size, num_layers)

    out = sales_rnn_forward(x, rnn_params, fc_w, fc_b)
    out = jax.block_until_ready(out)

    ref = sales_rnn_reference(x, rnn_params, fc_w, fc_b)
    assert out.shape == (batch, output_size)
    assert jnp.allclose(out, ref, rtol=1e-3, atol=1e-3), (out, ref)

    print("KERNEL_OK")
</pallas_src>

<mosaic_0001>
module attributes {stable_mosaic.version = 11 : i64} {
  func.func @kernel(%arg0: memref<64x128xf32, #tpu.memory_space<vmem>>, %arg1: memref<128x128xf32, #tpu.memory_space<vmem>>, %arg2: memref<128x128xf32, #tpu.memory_space<vmem>>, %arg3: memref<1x128xf32, #tpu.memory_space<vmem>>, %arg4: memref<128x128xf32, #tpu.memory_space<vmem>>, %arg5: memref<128x128xf32, #tpu.memory_space<vmem>>, %arg6: memref<1x128xf32, #tpu.memory_space<vmem>>, %arg7: memref<128x1xf32, #tpu.memory_space<vmem>>, %arg8: memref<1x1xf32, #tpu.memory_space<vmem>>, %arg9: memref<8x1xf32, #tpu.memory_space<vmem>>, %arg10: memref<64x128xf32, #tpu.memory_space<vmem>>) attributes {dimension_semantics = [], scalar_prefetch = 0 : i64, scratch_operands = 1 : i64, tpu.core_type = #tpu.core_type<tc>} {
    %c0 = arith.constant 0 : index
    %c0_0 = arith.constant 0 : index
    %0 = vector.load %arg1[%c0, %c0_0] : memref<128x128xf32, #tpu.memory_space<vmem>>, vector<128x128xf32>
    %c0_1 = arith.constant 0 : index
    %c0_2 = arith.constant 0 : index
    %1 = vector.load %arg2[%c0_1, %c0_2] : memref<128x128xf32, #tpu.memory_space<vmem>>, vector<128x128xf32>
    %c0_3 = arith.constant 0 : index
    %c0_4 = arith.constant 0 : index
    %2 = vector.load %arg3[%c0_3, %c0_4] : memref<1x128xf32, #tpu.memory_space<vmem>>, vector<1x128xf32>
    %c0_5 = arith.constant 0 : index
    %c0_6 = arith.constant 0 : index
    %3 = vector.load %arg0[%c0_5, %c0_6] : memref<64x128xf32, #tpu.memory_space<vmem>>, vector<64x128xf32>
    %cst = arith.constant dense<0.000000e+00> : vector<64x128xf32>
    %4 = tpu.matmul %3, %0, %cst {dimension_numbers = #tpu.dot_dimension_numbers<[1], [0], [0], [1], [0, 0, 1, 1], [], []>} : vector<64x128xf32>, vector<128x128xf32>, vector<64x128xf32> -> vector<64x128xf32>
    %5 = vector.broadcast %2 : vector<1x128xf32> to vector<64x128xf32>
    %6 = arith.addf %4, %5 : vector<64x128xf32>
    %cst_7 = arith.constant 0.000000e+00 : f32
    %7 = vector.broadcast %cst_7 : f32 to vector<8x128xf32>
    %8 = vector.extract_strided_slice %6 {offsets = [0, 0], sizes = [8, 128], strides = [1, 1]} : vector<64x128xf32> to vector<8x128xf32>
    %cst_8 = arith.constant dense<0.000000e+00> : vector<8x128xf32>
    %9 = tpu.matmul %7, %1, %cst_8 {dimension_numbers = #tpu.dot_dimension_numbers<[1], [0], [0], [1], [0, 0, 1, 1], [], []>} : vector<8x128xf32>, vector<128x128xf32>, vector<8x128xf32> -> vector<8x128xf32>
    %10 = arith.addf %8, %9 : vector<8x128xf32>
    %11 = math.tanh %10 : vector<8x128xf32>
    %c0_9 = arith.constant 0 : index
    %c0_10 = arith.constant 0 : index
    %12 = vector.load %arg10[%c0_9, %c0_10] : memref<64x128xf32, #tpu.memory_space<vmem>>, vector<8x128xf32>
    tpu.vector_store %arg10[%c0_9, %c0_10], %11 {strides = array<i32>} : memref<64x128xf32, #tpu.memory_space<vmem>>, vector<8x128xf32>,
    %13 = vector.extract_strided_slice %6 {offsets = [8, 0], sizes = [8, 128], strides = [1, 1]} : vector<64x128xf32> to vector<8x128xf32>
    %cst_11 = arith.constant dense<0.000000e+00> : vector<8x128xf32>
    %14 = tpu.matmul %11, %1, %cst_11 {dimension_numbers = #tpu.dot_dimension_numbers<[1], [0], [0], [1], [0, 0, 1, 1], [], []>} : vector<8x128xf32>, vector<128x128xf32>, vector<8x128xf32> -> vector<8x128xf32>
    %15 = arith.addf %13, %14 : vector<8x128xf32>
    %16 = math.tanh %15 : vector<8x128xf32>
    %c8 = arith.constant 8 : index
    %c0_12 = arith.constant 0 : index
    %17 = vector.load %arg10[%c8, %c0_12] : memref<64x128xf32, #tpu.memory_space<vmem>>, vector<8x128xf32>
    tpu.vector_store %arg10[%c8, %c0_12], %16 {strides = array<i32>} : memref<64x128xf32, #tpu.memory_space<vmem>>, vector<8x128xf32>,
    %18 = vector.extract_strided_slice %6 {offsets = [16, 0], sizes = [8, 128], strides = [1, 1]} : vector<64x128xf32> to vector<8x128xf32>
    %cst_13 = arith.constant dense<0.000000e+00> : vector<8x128xf32>
    %19 = tpu.matmul %16, %1, %cst_13 {dimension_numbers = #tpu.dot_dimension_numbers<[1], [0], [0], [1], [0, 0, 1, 1], [], []>} : vector<8x128xf32>, vector<128x128xf32>, vector<8x128xf32> -> vector<8x128xf32>
    %20 = arith.addf %18, %19 : vector<8x128xf32>
    %21 = math.tanh %20 : vector<8x128xf32>
    %c16 = arith.constant 16 : index
    %c0_14 = arith.constant 0 : index
    %22 = vector.load %arg10[%c16, %c0_14] : memref<64x128xf32, #tpu.memory_space<vmem>>, vector<8x128xf32>
    tpu.vector_store %arg10[%c16, %c0_14], %21 {strides = array<i32>} : memref<64x128xf32, #tpu.memory_space<vmem>>, vector<8x128xf32>,
    %23 = vector.extract_strided_slice %6 {offsets = [24, 0], sizes = [8, 128], strides = [1, 1]} : vector<64x128xf32> to vector<8x128xf32>
    %cst_15 = arith.constant dense<0.000000e+00> : vector<8x128xf32>
    %24 = tpu.matmul %21, %1, %cst_15 {dimension_numbers = #tpu.dot_dimension_numbers<[1], [0], [0], [1], [0, 0, 1, 1], [], []>} : vector<8x128xf32>, vector<128x128xf32>, vector<8x128xf32> -> vector<8x128xf32>
    %25 = arith.addf %23, %24 : vector<8x128xf32>
    %26 = math.tanh %25 : vector<8x128xf32>
    %c24 = arith.constant 24 : index
    %c0_16 = arith.constant 0 : index
    %27 = vector.load %arg10[%c24, %c0_16] : memref<64x128xf32, #tpu.memory_space<vmem>>, vector<8x128xf32>
    tpu.vector_store %arg10[%c24, %c0_16], %26 {strides = array<i32>} : memref<64x128xf32, #tpu.memory_space<vmem>>, vector<8x128xf32>,
    %28 = vector.extract_strided_slice %6 {offsets = [32, 0], sizes = [8, 128], strides = [1, 1]} : vector<64x128xf32> to vector<8x128xf32>
    %cst_17 = arith.constant dense<0.000000e+00> : vector<8x128xf32>
    %29 = tpu.matmul %26, %1, %cst_17 {dimension_numbers = #tpu.dot_dimension_numbers<[1], [0], [0], [1], [0, 0, 1, 1], [], []>} : vector<8x128xf32>, vector<128x128xf32>, vector<8x128xf32> -> vector<8x128xf32>
    %30 = arith.addf %28, %29 : vector<8x128xf32>
    %31 = math.tanh %30 : vector<8x128xf32>
    %c32 = arith.constant 32 : index
    %c0_18 = arith.constant 0 : index
    %32 = vector.load %arg10[%c32, %c0_18] : memref<64x128xf32, #tpu.memory_space<vmem>>, vector<8x128xf32>
    tpu.vector_store %arg10[%c32, %c0_18], %31 {strides = array<i32>} : memref<64x128xf32, #tpu.memory_space<vmem>>, vector<8x128xf32>,
    %33 = vector.extract_strided_slice %6 {offsets = [40, 0], sizes = [8, 128], strides = [1, 1]} : vector<64x128xf32> to vector<8x128xf32>
    %cst_19 = arith.constant dense<0.000000e+00> : vector<8x128xf32>
    %34 = tpu.matmul %31, %1, %cst_19 {dimension_numbers = #tpu.dot_dimension_numbers<[1], [0], [0], [1], [0, 0, 1, 1], [], []>} : vector<8x128xf32>, vector<128x128xf32>, vector<8x128xf32> -> vector<8x128xf32>
    %35 = arith.addf %33, %34 : vector<8x128xf32>
    %36 = math.tanh %35 : vector<8x128xf32>
    %c40 = arith.constant 40 : index
    %c0_20 = arith.constant 0 : index
    %37 = vector.load %arg10[%c40, %c0_20] : memref<64x128xf32, #tpu.memory_space<vmem>>, vector<8x128xf32>
    tpu.vector_store %arg10[%c40, %c0_20], %36 {strides = array<i32>} : memref<64x128xf32, #tpu.memory_space<vmem>>, vector<8x128xf32>,
    %38 = vector.extract_strided_slice %6 {offsets = [48, 0], sizes = [8, 128], strides = [1, 1]} : vector<64x128xf32> to vector<8x128xf32>
    %cst_21 = arith.constant dense<0.000000e+00> : vector<8x128xf32>
    %39 = tpu.matmul %36, %1, %cst_21 {dimension_numbers = #tpu.dot_dimension_numbers<[1], [0], [0], [1], [0, 0, 1, 1], [], []>} : vector<8x128xf32>, vector<128x128xf32>, vector<8x128xf32> -> vector<8x128xf32>
    %40 = arith.addf %38, %39 : vector<8x128xf32>
    %41 = math.tanh %40 : vector<8x128xf32>
    %c48 = arith.constant 48 : index
    %c0_22 = arith.constant 0 : index
    %42 = vector.load %arg10[%c48, %c0_22] : memref<64x128xf32, #tpu.memory_space<vmem>>, vector<8x128xf32>
    tpu.vector_store %arg10[%c48, %c0_22], %41 {strides = array<i32>} : memref<64x128xf32, #tpu.memory_space<vmem>>, vector<8x128xf32>,
    %43 = vector.extract_strided_slice %6 {offsets = [56, 0], sizes = [8, 128], strides = [1, 1]} : vector<64x128xf32> to vector<8x128xf32>
    %cst_23 = arith.constant dense<0.000000e+00> : vector<8x128xf32>
    %44 = tpu.matmul %41, %1, %cst_23 {dimension_numbers = #tpu.dot_dimension_numbers<[1], [0], [0], [1], [0, 0, 1, 1], [], []>} : vector<8x128xf32>, vector<128x128xf32>, vector<8x128xf32> -> vector<8x128xf32>
    %45 = arith.addf %43, %44 : vector<8x128xf32>
    %46 = math.tanh %45 : vector<8x128xf32>
    %c56 = arith.constant 56 : index
    %c0_24 = arith.constant 0 : index
    %47 = vector.load %arg10[%c56, %c0_24] : memref<64x128xf32, #tpu.memory_space<vmem>>, vector<8x128xf32>
    tpu.vector_store %arg10[%c56, %c0_24], %46 {strides = array<i32>} : memref<64x128xf32, #tpu.memory_space<vmem>>, vector<8x128xf32>,
    %c0_25 = arith.constant 0 : index
    %c0_26 = arith.constant 0 : index
    %48 = vector.load %arg4[%c0_25, %c0_26] : memref<128x128xf32, #tpu.memory_space<vmem>>, vector<128x128xf32>
    %c0_27 = arith.constant 0 : index
    %c0_28 = arith.constant 0 : index
    %49 = vector.load %arg5[%c0_27, %c0_28] : memref<128x128xf32, #tpu.memory_space<vmem>>, vector<128x128xf32>
    %c0_29 = arith.constant 0 : index
    %c0_30 = arith.constant 0 : index
    %50 = vector.load %arg6[%c0_29, %c0_30] : memref<1x128xf32, #tpu.memory_space<vmem>>, vector<1x128xf32>
    %c0_31 = arith.constant 0 : index
    %c0_32 = arith.constant 0 : index
    %51 = vector.load %arg10[%c0_31, %c0_32] : memref<64x128xf32, #tpu.memory_space<vmem>>, vector<64x128xf32>
    %cst_33 = arith.constant dense<0.000000e+00> : vector<64x128xf32>
    %52 = tpu.matmul %51, %48, %cst_33 {dimension_numbers = #tpu.dot_dimension_numbers<[1], [0], [0], [1], [0, 0, 1, 1], [], []>} : vector<64x128xf32>, vector<128x128xf32>, vector<64x128xf32> -> vector<64x128xf32>
    %53 = vector.broadcast %50 : vector<1x128xf32> to vector<64x128xf32>
    %54 = arith.addf %52, %53 : vector<64x128xf32>
    %cst_34 = arith.constant 0.000000e+00 : f32
    %55 = vector.broadcast %cst_34 : f32 to vector<8x128xf32>
    %56 = vector.extract_strided_slice %54 {offsets = [0, 0], sizes = [8, 128], strides = [1, 1]} : vector<64x128xf32> to vector<8x128xf32>
    %cst_35 = arith.constant dense<0.000000e+00> : vector<8x128xf32>
    %57 = tpu.matmul %55, %49, %cst_35 {dimension_numbers = #tpu.dot_dimension_numbers<[1], [0], [0], [1], [0, 0, 1, 1], [], []>} : vector<8x128xf32>, vector<128x128xf32>, vector<8x128xf32> -> vector<8x128xf32>
    %58 = arith.addf %56, %57 : vector<8x128xf32>
    %59 = math.tanh %58 : vector<8x128xf32>
    %60 = vector.extract_strided_slice %54 {offsets = [8, 0], sizes = [8, 128], strides = [1, 1]} : vector<64x128xf32> to vector<8x128xf32>
    %cst_36 = arith.constant dense<0.000000e+00> : vector<8x128xf32>
    %61 = tpu.matmul %59, %49, %cst_36 {dimension_numbers = #tpu.dot_dimension_numbers<[1], [0], [0], [1], [0, 0, 1, 1], [], []>} : vector<8x128xf32>, vector<128x128xf32>, vector<8x128xf32> -> vector<8x128xf32>
    %62 = arith.addf %60, %61 : vector<8x128xf32>
    %63 = math.tanh %62 : vector<8x128xf32>
    %64 = vector.extract_strided_slice %54 {offsets = [16, 0], sizes = [8, 128], strides = [1, 1]} : vector<64x128xf32> to vector<8x128xf32>
    %cst_37 = arith.constant dense<0.000000e+00> : vector<8x128xf32>
    %65 = tpu.matmul %63, %49, %cst_37 {dimension_numbers = #tpu.dot_dimension_numbers<[1], [0], [0], [1], [0, 0, 1, 1], [], []>} : vector<8x128xf32>, vector<128x128xf32>, vector<8x128xf32> -> vector<8x128xf32>
    %66 = arith.addf %64, %65 : vector<8x128xf32>
    %67 = math.tanh %66 : vector<8x128xf32>
    %68 = vector.extract_strided_slice %54 {offsets = [24, 0], sizes = [8, 128], strides = [1, 1]} : vector<64x128xf32> to vector<8x128xf32>
    %cst_38 = arith.constant dense<0.000000e+00> : vector<8x128xf32>
    %69 = tpu.matmul %67, %49, %cst_38 {dimension_numbers = #tpu.dot_dimension_numbers<[1], [0], [0], [1], [0, 0, 1, 1], [], []>} : vector<8x128xf32>, vector<128x128xf32>, vector<8x128xf32> -> vector<8x128xf32>
    %70 = arith.addf %68, %69 : vector<8x128xf32>
    %71 = math.tanh %70 : vector<8x128xf32>
    %72 = vector.extract_strided_slice %54 {offsets = [32, 0], sizes = [8, 128], strides = [1, 1]} : vector<64x128xf32> to vector<8x128xf32>
    %cst_39 = arith.constant dense<0.000000e+00> : vector<8x128xf32>
    %73 = tpu.matmul %71, %49, %cst_39 {dimension_numbers = #tpu.dot_dimension_numbers<[1], [0], [0], [1], [0, 0, 1, 1], [], []>} : vector<8x128xf32>, vector<128x128xf32>, vector<8x128xf32> -> vector<8x128xf32>
    %74 = arith.addf %72, %73 : vector<8x128xf32>
    %75 = math.tanh %74 : vector<8x128xf32>
    %76 = vector.extract_strided_slice %54 {offsets = [40, 0], sizes = [8, 128], strides = [1, 1]} : vector<64x128xf32> to vector<8x128xf32>
    %cst_40 = arith.constant dense<0.000000e+00> : vector<8x128xf32>
    %77 = tpu.matmul %75, %49, %cst_40 {dimension_numbers = #tpu.dot_dimension_numbers<[1], [0], [0], [1], [0, 0, 1, 1], [], []>} : vector<8x128xf32>, vector<128x128xf32>, vector<8x128xf32> -> vector<8x128xf32>
    %78 = arith.addf %76, %77 : vector<8x128xf32>
    %79 = math.tanh %78 : vector<8x128xf32>
    %80 = vector.extract_strided_slice %54 {offsets = [48, 0], sizes = [8, 128], strides = [1, 1]} : vector<64x128xf32> to vector<8x128xf32>
    %cst_41 = arith.constant dense<0.000000e+00> : vector<8x128xf32>
    %81 = tpu.matmul %79, %49, %cst_41 {dimension_numbers = #tpu.dot_dimension_numbers<[1], [0], [0], [1], [0, 0, 1, 1], [], []>} : vector<8x128xf32>, vector<128x128xf32>, vector<8x128xf32> -> vector<8x128xf32>
    %82 = arith.addf %80, %81 : vector<8x128xf32>
    %83 = math.tanh %82 : vector<8x128xf32>
    %84 = vector.extract_strided_slice %54 {offsets = [56, 0], sizes = [8, 128], strides = [1, 1]} : vector<64x128xf32> to vector<8x128xf32>
    %cst_42 = arith.constant dense<0.000000e+00> : vector<8x128xf32>
    %85 = tpu.matmul %83, %49, %cst_42 {dimension_numbers = #tpu.dot_dimension_numbers<[1], [0], [0], [1], [0, 0, 1, 1], [], []>} : vector<8x128xf32>, vector<128x128xf32>, vector<8x128xf32> -> vector<8x128xf32>
    %86 = arith.addf %84, %85 : vector<8x128xf32>
    %87 = math.tanh %86 : vector<8x128xf32>
    %c0_43 = arith.constant 0 : index
    %c0_44 = arith.constant 0 : index
    %88 = vector.load %arg7[%c0_43, %c0_44] : memref<128x1xf32, #tpu.memory_space<vmem>>, vector<128x1xf32>
    %cst_45 = arith.constant dense<0.000000e+00> : vector<8x1xf32>
    %89 = tpu.matmul %87, %88, %cst_45 {dimension_numbers = #tpu.dot_dimension_numbers<[1], [0], [0], [1], [0, 0, 1, 1], [], []>} : vector<8x128xf32>, vector<128x1xf32>, vector<8x1xf32> -> vector<8x1xf32>
    %c0_46 = arith.constant 0 : index
    %c0_47 = arith.constant 0 : index
    %90 = vector.load %arg8[%c0_46, %c0_47] : memref<1x1xf32, #tpu.memory_space<vmem>>, vector<1x1xf32>
    %91 = vector.broadcast %90 : vector<1x1xf32> to vector<8x1xf32>
    %92 = arith.addf %89, %91 : vector<8x1xf32>
    %cst_48 = arith.constant 0.000000e+00 : f32
    %93 = vector.broadcast %cst_48 : f32 to vector<8x1xf32>
    %94 = arith.maximumf %92, %93 : vector<8x1xf32>
    %c0_49 = arith.constant 0 : index
    %c0_50 = arith.constant 0 : index
    %95 = vector.load %arg9[%c0_49, %c0_50] : memref<8x1xf32, #tpu.memory_space<vmem>>, vector<8x1xf32>
    tpu.vector_store %arg9[%c0_49, %c0_50], %94 {strides = array<i32>} : memref<8x1xf32, #tpu.memory_space<vmem>>, vector<8x1xf32>,
    return
  }
}

</mosaic_0001>

<bundles_post_ra>
// kernel: tpu_custom_call.1
= control target key start
LH: loop header
LB: loop body
LE: loop exit
PB: predicated region body
PF: predicated region fallthrough
CT: control target
= control target key end

     0   :  { %s3932_s0 = inlined_call_operand.hbm [shape: f32[64,128], index: 0, kind: input, shape index: {}]   ;;  %s3933_s1 = inlined_call_operand.vmem [shape: f32[128,128], index: 1, kind: input, shape index: {}]   ;;  %s3934_s2 = inlined_call_operand.hbm [shape: f32[128,128], index: 2, kind: input, shape index: {}]   ;;  %s3935_s3 = inlined_call_operand.vmem [shape: f32[1,128], index: 3, kind: input, shape index: {}]   ;;  %s3936_s4 = inlined_call_operand.hbm [shape: f32[128,128], index: 4, kind: input, shape index: {}]   ;;  %s3937_s5 = inlined_call_operand.hbm [shape: f32[128,128], index: 5, kind: input, shape index: {}]   ;;  %s3938_s6 = inlined_call_operand.vmem [shape: f32[1,128], index: 6, kind: input, shape index: {}]   ;;  %s3939_s7 = inlined_call_operand.vmem [shape: f32[128,1], index: 7, kind: input, shape index: {}]   ;;  %s3940_s8 = inlined_call_operand.<no memory space> [shape: f32[1,1], index: 8, kind: input, shape index: {}]   ;;  %s3941_s9 = inlined_call_operand.vmem [shape: f32[8,1], index: 9, kind: output, shape index: {}]  }
   0x1   :  { %v14_v0 = vstv %s3940_s8 }
   0x2   :  { %15 = vst [vmem:[#allocation3] sm:$0x1] %v14_v0 }
   0x3   :  { %16 = vsyncpa [#allocation5], 0 }
   0x4   :  { %17 = vsyncpa [#allocation7], 0 }
   0x5   :  { %18 = vsyncpa [#allocation10], 0  ;;  %s3286_s11 = smov [#allocation6]   ;;  %s3287_s13 = smov [#allocation4]  }
   0x6   :  { %s38_s12 = sshll.u32 %s3286_s11, 4  ;;  %s24_s14 = sshll.u32 %s3287_s13, 4  ;;  %s39_s12 = int_to_ptr.vmem [resolvable:$true] %s38_s12  ;;  %s3348_s14 = int_to_ptr.vmem [resolvable:$true] %s24_s14 }
   0x7   :  { %s3192_s17 = scalar_lea.hbm %s3934_s2, 2048 }
   0x8   :  { %p3193_p0 = scmp.ne.s32.totalorder %s3934_s2, %s3192_s17  ;;  %p3196_p1 = scmp.lt.u32.totalorder %s3192_s17, %s3934_s2 }
   0xa   :  { %p3198_p2 = pnand %p3196_p1, %p3193_p0 }
   0xc   :  { %3201 = shalt.err (!%p3198_p2)
}
   0xd   :  { %s3202_s21 = scalar_lea.vmem %s39_s12, 2048  ;;  %p3207_p4 = scmp.lt.s32.totalorder %s39_s12, %s39_s12 }
   0xe   :  { %p3203_p3 = scmp.ne.s32.totalorder %s39_s12, %s3202_s21  ;;  %p3208_p5 = scmp.lt.s32.totalorder %s3202_s21, %s3202_s21 }
  0x10   :  { %p3209_p6 = por %p3208_p5, %p3207_p4 }
  0x12   :  { %p3210_p7 = pnand %p3209_p6, %p3203_p3 }
  0x14   :  { %3213 = shalt.err (!%p3210_p7)
}
  0x15   :  { %s3288_s22 = smov 128   ;;  %s3289_s23 = smov 8  }
  0x16   :  { %44 = dma.hbm_to_vmem [thread:$0]  %s3934_s2, 2048, %s39_s12, [#allocation7], %s3288_s22, %s3288_s22, %s3289_s23  }
  0x17   :  { %s3214_s28 = scalar_lea.hbm %s3932_s0, 1024 }
  0x18   :  { %p3215_p8 = scmp.ne.s32.totalorder %s3932_s0, %s3214_s28  ;;  %p3218_p9 = scmp.lt.u32.totalorder %s3214_s28, %s3932_s0 }
  0x1a   :  { %p3220_p10 = pnand %p3218_p9, %p3215_p8 }
  0x1c   :  { %3223 = shalt.err (!%p3220_p10)
}
  0x1d   :  { %s3224_s13 = scalar_lea.vmem %s3348_s14, 1024  ;;  %p3229_p12 = scmp.lt.s32.totalorder %s3348_s14, %s3348_s14 }
  0x1e   :  { %p3225_p11 = scmp.ne.s32.totalorder %s3348_s14, %s3224_s13  ;;  %p3230_p13 = scmp.lt.s32.totalorder %s3224_s13, %s3224_s13 }
  0x20   :  { %p3231_p0 = por %p3230_p13, %p3229_p12 }
  0x22   :  { %p3232_p1 = pnand %p3231_p0, %p3225_p11 }
  0x24   :  { %3235 = shalt.err (!%p3232_p1)
}
  0x25   :  { %30 = dma.hbm_to_vmem [thread:$0]  %s3932_s0, 1024, %s3348_s14, [#allocation5], %s3288_s22, %s3288_s22, %s3289_s23  }
  0x26   :  { %s3290_s15 = smov [#allocation8]   ;;  %s3291_s17 = smov [#allocation9]  }
  0x27   :  { %s52_s16 = sshll.u32 %s3290_s15, 4  ;;  %s64_s18 = sshll.u32 %s3291_s17, 4  ;;  %s53_s16 = int_to_ptr.vmem [resolvable:$true] %s52_s16  ;;  %s3385_s18 = int_to_ptr.vmem [resolvable:$true] %s64_s18 }
  0x28   :  { %s3236_s20 = scalar_lea.hbm %s3936_s4, 2048 }
  0x29   :  { %p3237_p2 = scmp.ne.s32.totalorder %s3936_s4, %s3236_s20  ;;  %p3240_p3 = scmp.lt.u32.totalorder %s3236_s20, %s3936_s4 }
  0x2b   :  { %p3242_p4 = pnand %p3240_p3, %p3237_p2 }
  0x2d   :  { %3245 = shalt.err (!%p3242_p4)
}
  0x2e   :  { %s3246_s0 = scalar_lea.vmem %s53_s16, 2048  ;;  %p3251_p6 = scmp.lt.s32.totalorder %s53_s16, %s53_s16 }
  0x2f   :  { %p3247_p5 = scmp.ne.s32.totalorder %s53_s16, %s3246_s0  ;;  %p3252_p7 = scmp.lt.s32.totalorder %s3246_s0, %s3246_s0 }
  0x31   :  { %p3253_p8 = por %p3252_p7, %p3251_p6 }
  0x33   :  { %p3254_p9 = pnand %p3253_p8, %p3247_p5 }
  0x35   :  { %3257 = shalt.err (!%p3254_p9)
}
  0x36   :  { %58 = dma.hbm_to_vmem [thread:$0]  %s3936_s4, 2048, %s53_s16, [#allocation7], %s3288_s22, %s3288_s22, %s3289_s23  }
  0x37   :  { %s3258_s30 = scalar_lea.hbm %s3937_s5, 2048 }
  0x38   :  { %p3259_p10 = scmp.ne.s32.totalorder %s3937_s5, %s3258_s30  ;;  %p3262_p11 = scmp.lt.u32.totalorder %s3258_s30, %s3937_s5 }
  0x3a   :  { %p3264_p12 = pnand %p3262_p11, %p3259_p10 }
  0x3c   :  { %3267 = shalt.err (!%p3264_p12)
}
  0x3d   :  { %s3268_s12 = scalar_lea.vmem %s3385_s18, 2048  ;;  %p3273_p0 = scmp.lt.s32.totalorder %s3385_s18, %s3385_s18 }
  0x3e   :  { %p3269_p13 = scmp.ne.s32.totalorder %s3385_s18, %s3268_s12  ;;  %p3274_p1 = scmp.lt.s32.totalorder %s3268_s12, %s3268_s12 }
  0x40   :  { %p3275_p2 = por %p3274_p1, %p3273_p0 }
  0x42   :  { %p3276_p3 = pnand %p3275_p2, %p3269_p13 }
  0x44   :  { %3279 = shalt.err (!%p3276_p3)
}
  0x45   :  { %70 = dma.hbm_to_vmem [thread:$0]  %s3937_s5, 2048, %s3385_s18, [#allocation10], %s3288_s22, %s3288_s22, %s3289_s23  }
  0x46   :  { %3280 = dma.done.wait [#allocation5], 1024  }
  0x47   :  { %3281 = vsyncadd [#allocation5], 4294966272 }
  0x48   :  { %3282 = dma.done.wait [#allocation7], 4096  }
  0x49   :  { %3283 = vsyncadd [#allocation7], 4294963200 }
  0x4a   :  { %3284 = dma.done.wait [#allocation10], 2048  }
  0x4b   :  { %3285 = vsyncadd [#allocation10], 4294965248  ;;  %v3292_v1 = vmov 0.0|0.0   ;;  %vm3293_vm0 = vmmov 0   ;;  %v3294_v2 = vmov 0.0   ;;  %v89_v3 = vld [vmem:[%s3933_s1] sm:$0xff] }
  0x4c   :  { %2711 = vmatprep.subr.bf16.mxu1 %v3292_v1  ;;  %2072 = vmatprep.mubr.msk.f32.mxu1 %vm3293_vm0, %v3294_v2  ;;  %v90_v4 = vld [vmem:[%s3933_s1 + $0x8] sm:$0xff]  ;;  %v91_v8 = vld [vmem:[%s3933_s1 + $0x10] sm:$0xff]  ;;  %v92_v9 = vld [vmem:[%s3933_s1 + $0x18] sm:$0xff]  ;;  %vm1647_vm1 = vcmask 7168  }
  0x4d   :  { %v105_v5 = vld [vmem:[#allocation6] sm:$0xff]  ;;  %v2679_v6 = vpack.c.bf16 %v90_v4, %v89_v3  ;;  %v106_v7 = vld [vmem:[#allocation6 + $0x8] sm:$0xff]  ;;  %v2683_v11 = vpack.c.bf16 %v92_v9, %v91_v8  ;;  %v107_v12 = vld [vmem:[#allocation6 + $0x10] sm:$0xff] }
  0x4e   :  { %v3437_v10 = vpack.c.bf16 %v106_v7, %v105_v5  ;;  %v108_v13 = vld [vmem:[#allocation6 + $0x18] sm:$0xff]  ;;  %v94_v15 = vld [vmem:[%s3933_s1 + $0x28] sm:$0xff]  ;;  %v95_v20 = vld [vmem:[%s3933_s1 + $0x30] sm:$0xff] }
  0x4f   :  { %v93_v14 = vld [vmem:[%s3933_s1 + $0x20] sm:$0xff]  ;;  %2680 = vmatprep.subr.bf16.mxu0 %v2679_v6  ;;  %v3446_v16 = vpack.c.bf16 %v108_v13, %v107_v12  ;;  %v110_v19 = vld [vmem:[#allocation6 + $0x28] sm:$0xff]  ;;  %v96_v21 = vld [vmem:[%s3933_s1 + $0x38] sm:$0xff] }
  0x50   :  { %2682 = vmatpush3.bf16.msra.mxu0 %v2679_v6  ;;  %2713 = vmatpush3.bf16.msra.mxu1 %v3437_v10  ;;  %v2687_v17 = vpack.c.bf16 %v94_v15, %v93_v14  ;;  %v109_v18 = vld [vmem:[#allocation6 + $0x20] sm:$0xff]  ;;  %v2691_v23 = vpack.c.bf16 %v96_v21, %v95_v20  ;;  %v111_v24 = vld [vmem:[#allocation6 + $0x30] sm:$0xff]  ;;  %v112_v25 = vld [vmem:[#allocation6 + $0x38] sm:$0xff] }
  0x51   :  { %2684 = vmatprep.subr.bf16.mxu0 %v2683_v11  ;;  %2714 = vmatprep.subr.bf16.mxu1 %v3292_v1  ;;  %v3456_v22 = vpack.c.bf16 %v110_v19, %v109_v18  ;;  %v97_v26 = vld [vmem:[%s3933_s1 + $0x40] sm:$0xff]  ;;  %v98_v27 = vld [vmem:[%s3933_s1 + $0x48] sm:$0xff]  ;;  %v3466_v29 = vpack.c.bf16 %v112_v25, %v111_v24  ;;  %v99_v33 = vld [vmem:[%s3933_s1 + $0x50] sm:$0xff] }
  0x52   :  { %v122_v28 = vld [vmem:[#allocation4] sm:$0xff]  ;;  %v2695_v30 = vpack.c.bf16 %v98_v27, %v97_v26  ;;  %v114_v32 = vld [vmem:[#allocation6 + $0x48] sm:$0xff]  ;;  %v100_v34 = vld [vmem:[%s3933_s1 + $0x58] sm:$0xff] }
  0x53   :  { %2028 = vmatprep.mubr.f32.mxu0 %v122_v28  ;;  %v113_v31 = vld [vmem:[#allocation6 + $0x40] sm:$0xff]  ;;  %v2699_v36 = vpack.c.bf16 %v100_v34, %v99_v33  ;;  %v115_v37 = vld [vmem:[#allocation6 + $0x50] sm:$0xff]  ;;  %v116_v38 = vld [vmem:[#allocation6 + $0x58] sm:$0xff] }
  0x54   :  { %2686 = vmatpush3.bf16.msra.mxu0 %v2683_v11  ;;  %2716 = vmatpush3.bf16.msra.mxu1 %v3446_v16  ;;  %v3476_v35 = vpack.c.bf16 %v114_v32, %v113_v31  ;;  %v101_v39 = vld [vmem:[%s3933_s1 + $0x60] sm:$0xff]  ;;  %v102_v40 = vld [vmem:[%s3933_s1 + $0x68] sm:$0xff]  ;;  %v3486_v41 = vpack.c.bf16 %v116_v38, %v115_v37  ;;  %v103_v45 = vld [vmem:[%s3933_s1 + $0x70] sm:$0xff] }
  0x55   :  { %2688 = vmatprep.subr.bf16.mxu0 %v2687_v17  ;;  %2717 = vmatprep.subr.bf16.mxu1 %v3292_v1  ;;  %v2703_v42 = vpack.c.bf16 %v102_v40, %v101_v39  ;;  %v117_v43 = vld [vmem:[#allocation6 + $0x60] sm:$0xff]  ;;  %v118_v44 = vld [vmem:[#allocation6 + $0x68] sm:$0xff]  ;;  %v104_v46 = vld [vmem:[%s3933_s1 + $0x78] sm:$0xff] }
  0x56   :  { %v3496_v47 = vpack.c.bf16 %v118_v44, %v117_v43  ;;  %v2707_v48 = vpack.c.bf16 %v104_v46, %v103_v45  ;;  %v119_v49 = vld [vmem:[#allocation6 + $0x70] sm:$0xff]  ;;  %v120_v50 = vld [vmem:[#allocation6 + $0x78] sm:$0xff]  ;;  %v123_v52 = vld [vmem:[#allocation4 + $0x8] sm:$0xff] }
  0x57   :  { %v3500_v51 = vpack.c.bf16 %v120_v50, %v119_v49  ;;  %v124_v53 = vld [vmem:[#allocation4 + $0x10] sm:$0xff]  ;;  %v125_v54 = vld [vmem:[#allocation4 + $0x18] sm:$0xff]  ;;  %v126_v55 = vld [vmem:[#allocation4 + $0x20] sm:$0xff] }
  0x58   :  { %2690 = vmatpush3.bf16.msra.mxu0 %v2687_v17  ;;  %2719 = vmatpush3.bf16.msra.mxu1 %v3456_v22  ;;  %v127_v56 = vld [vmem:[#allocation4 + $0x28] sm:$0xff]  ;;  %v128_v57 = vld [vmem:[#allocation4 + $0x30] sm:$0xff]  ;;  %v129_v58 = vld [vmem:[#allocation4 + $0x38] sm:$0xff] }
  0x59   :  { %2692 = vmatprep.subr.bf16.mxu0 %v2691_v23  ;;  %2720 = vmatprep.subr.bf16.mxu1 %v3292_v1  ;;  %v3546_v59 = vld [vmem:[%s3935_s3] ss:$0 sm:$0xff]  ;;  %v827_v38 = vld [vmem:[#allocation8 + $0x10] sm:$0xff]  ;;  %v830_v43 = vld [vmem:[#allocation8 + $0x28] sm:$0xff] }
  0x5a   :  { %v828_v39 = vld [vmem:[#allocation8 + $0x18] sm:$0xff]  ;;  %v831_v45 = vld [vmem:[#allocation8 + $0x30] sm:$0xff]  ;;  %v834_v49 = vld [vmem:[#allocation8 + $0x48] sm:$0xff] }
  0x5b   :  { %v2907_v40 = vpack.c.bf16 %v828_v39, %v827_v38  ;;  %v832_v46 = vld [vmem:[#allocation8 + $0x38] sm:$0xff] }
  0x5c   :  { %2694 = vmatpush3.bf16.msra.mxu0 %v2691_v23  ;;  %2722 = vmatpush3.bf16.msra.mxu1 %v3466_v29 }
  0x5d   :  { %2696 = vmatprep.subr.bf16.mxu0 %v2695_v30  ;;  %2723 = vmatprep.subr.bf16.mxu1 %v3292_v1 }
  0x60   :  { %2698 = vmatpush3.bf16.msra.mxu0 %v2695_v30  ;;  %2725 = vmatpush3.bf16.msra.mxu1 %v3476_v35 }
  0x61   :  { %2700 = vmatprep.subr.bf16.mxu0 %v2699_v36  ;;  %2726 = vmatprep.subr.bf16.mxu1 %v3292_v1 }
  0x64   :  { %2702 = vmatpush3.bf16.msra.mxu0 %v2699_v36  ;;  %2728 = vmatpush3.bf16.msra.mxu1 %v3486_v41 }
  0x65   :  { %2704 = vmatprep.subr.bf16.mxu0 %v2703_v42  ;;  %2729 = vmatprep.subr.bf16.mxu1 %v3292_v1 }
  0x68   :  { %2706 = vmatpush3.bf16.msra.mxu0 %v2703_v42  ;;  %2731 = vmatpush3.bf16.msra.mxu1 %v3496_v47  ;;  %v829_v42 = vld [vmem:[#allocation8 + $0x20] sm:$0xff] }
  0x69   :  { %2708 = vmatprep.subr.bf16.mxu0 %v2707_v48  ;;  %2732 = vmatprep.subr.bf16.mxu1 %v3292_v1  ;;  %v2911_v44 = vpack.c.bf16 %v830_v43, %v829_v42 }
  0x6c   :  { %2710 = vmatpush3.bf16.msra.mxu0 %v2707_v48  ;;  %2734 = vmatpush3.bf16.msra.mxu1 %v3500_v51  ;;  %v833_v48 = vld [vmem:[#allocation8 + $0x40] sm:$0xff] }
  0x6d   :  { %2735 = vmatprep.subr.bf16.mxu0 %v3292_v1  ;;  %2759 = vmatprep.subr.bf16.mxu1 %v3292_v1  ;;  %v2919_v50 = vpack.c.bf16 %v834_v49, %v833_v48 }
  0x6f   :  { %2029 = vmatmul.mubr.f32.vlgmr.msra.gmra.mrb[0].mxu0 %v123_v52  ;;  %2073 = vmatmul.mubr.f32.vlgmr.msra.gmra.mrb[0].mxu1 %v3294_v2  ;;  %v836_v52 = vld [vmem:[#allocation8 + $0x58] sm:$0xff] }
  0x70   :  { %2737 = vmatpush3.bf16.msra.mxu0 %v3437_v10  ;;  %2761 = vmatpush3.bf16.msra.mxu1 %v3437_v10 }
  0x71   :  { %2738 = vmatprep.subr.bf16.mxu0 %v3292_v1  ;;  %2762 = vmatprep.subr.bf16.mxu1 %v3292_v1 }
  0x72   :  { %2142 = vmatprep.mubr.msk.f32.mxu1 %vm3293_vm0, %v3294_v2  ;;  %2031 = vmatprep.mubr.f32.mxu0 %v124_v53 }
  0x73   :  { %2032 = vmatmul.mubr.f32.gmra.mrb[2].mxu0 %v125_v54  ;;  %v837_v54 = vld [vmem:[#allocation8 + $0x60] sm:$0xff] }
  0x74   :  { %2740 = vmatpush3.bf16.msra.mxu0 %v3446_v16  ;;  %2764 = vmatpush3.bf16.msra.mxu1 %v3446_v16 }
  0x75   :  { %2741 = vmatprep.subr.bf16.mxu0 %v3292_v1  ;;  %2765 = vmatprep.subr.bf16.mxu1 %v3292_v1 }
  0x76   :  { %2034 = vmatprep.mubr.f32.mxu0 %v126_v55  ;;  %v838_v55 = vld [vmem:[#allocation8 + $0x68] sm:$0xff] }
  0x77   :  { %2035 = vmatmul.mubr.f32.gmra.mrb[4].mxu0 %v127_v56  ;;  %v2927_v56 = vpack.c.bf16 %v838_v55, %v837_v54 }
  0x78   :  { %2743 = vmatpush3.bf16.msra.mxu0 %v3456_v22  ;;  %2767 = vmatpush3.bf16.msra.mxu1 %v3456_v22 }
  0x79   :  { %2744 = vmatprep.subr.bf16.mxu0 %v3292_v1  ;;  %2768 = vmatprep.subr.bf16.mxu1 %v3292_v1 }
  0x7a   :  { %2037 = vmatprep.mubr.f32.mxu0 %v128_v57  ;;  %v839_v57 = vld [vmem:[#allocation8 + $0x70] sm:$0xff] }
  0x7b   :  { %2038 = vmatmul.mubr.f32.gmra.mrb[6].mxu0 %v129_v58  ;;  %v840_v58 = vld [vmem:[#allocation8 + $0x78] sm:$0xff] }
  0x7c   :  { %2746 = vmatpush3.bf16.msra.mxu0 %v3466_v29  ;;  %2770 = vmatpush3.bf16.msra.mxu1 %v3466_v29 }
  0x7d   :  { %2747 = vmatprep.subr.bf16.mxu0 %v3292_v1  ;;  %2771 = vmatprep.subr.bf16.mxu1 %v3292_v1 }
  0x7e   :  { %2107 = vmatprep.mubr.msk.f32.mxu0 %vm3293_vm0, %v3294_v2 }
  0x80   :  { %2749 = vmatpush3.bf16.msra.mxu0 %v3476_v35  ;;  %2773 = vmatpush3.bf16.msra.mxu1 %v3476_v35 }
  0x81   :  { %2750 = vmatprep.subr.bf16.mxu0 %v3292_v1  ;;  %2774 = vmatprep.subr.bf16.mxu1 %v3292_v1 }
  0x84   :  { %2752 = vmatpush3.bf16.msra.mxu0 %v3486_v41  ;;  %2776 = vmatpush3.bf16.msra.mxu1 %v3486_v41 }
  0x85   :  { %2753 = vmatprep.subr.bf16.mxu0 %v3292_v1  ;;  %2777 = vmatprep.subr.bf16.mxu1 %v3292_v1 }
  0x88   :  { %2755 = vmatpush3.bf16.msra.mxu0 %v3496_v47  ;;  %2779 = vmatpush3.bf16.msra.mxu1 %v3496_v47 }
  0x89   :  { %2756 = vmatprep.subr.bf16.mxu0 %v3292_v1  ;;  %2780 = vmatprep.subr.bf16.mxu1 %v3292_v1 }
  0x8c   :  { %2758 = vmatpush3.bf16.msra.mxu0 %v3500_v51  ;;  %2782 = vmatpush3.bf16.msra.mxu1 %v3500_v51 }
  0x8d   :  { %2783 = vmatprep.subr.bf16.mxu0 %v3292_v1  ;;  %2807 = vmatprep.subr.bf16.mxu1 %v3292_v1 }
 0x142   :  { %v2030_v60 = vpop.f32.mrb[0].mxu0  ;;  %v307_v61 = vpop.f32.mrb[0].mxu1 }
 0x143   :  { %v202_v62 = vpop.f32.mrb[1].mxu0  ;;  %v2074_v63 = vpop.f32.mrb[1].mxu1  ;;  %v208_v12 = vadd.f32 %v2030_v60, %v3546_v59  ;;  %v2931_v60 = vpack.c.bf16 %v840_v58, %v839_v57 }
 0x144   :  { %v203_v0 = vadd.f32 %v3546_v59, %v202_v62  ;;  %v842_v62 = vld [vmem:[#allocation9 + $0x8] sm:$0xff] }
 0x146   :  { %v311_v3 = vadd.f32 %v307_v61, %v203_v0  ;;  %v2033_v5 = vpop.f32.mrb[2].mxu0  ;;  %v841_v61 = vld [vmem:[#allocation9] sm:$0xff]  ;;  %v843_v0 = vld [vmem:[#allocation9 + $0x10] sm:$0xff] }
 0x147   :  { %v212_v6 = vpop.f32.mrb[3].mxu0  ;;  %v218_v24 = vadd.f32 %v2033_v5, %v3546_v59  ;;  %v3674_v63 = vpack.c.bf16 %v842_v62, %v841_v61  ;;  %v845_v5 = vld [vmem:[#allocation9 + $0x20] sm:$0xff] }
 0x148   :  { %3160 = vtanh.f32 %v311_v3  ;;  %v213_v18 = vadd.f32 %v3546_v59, %v212_v6  ;;  %v844_v3 = vld [vmem:[#allocation9 + $0x18] sm:$0xff]  ;;  %v846_v6 = vld [vmem:[#allocation9 + $0x28] sm:$0xff] }
 0x14a   :  { %v3570_v7 = vpop.f32.mrb[4].mxu0 }
 0x14b   :  { %v3572_v8 = vpop.f32.mrb[5].mxu0 }
 0x14c   :  { %v223_v30 = vadd.f32 %v3546_v59, %v3572_v8  ;;  %v847_v8 = vld [vmem:[#allocation9 + $0x30] sm:$0xff] }
 0x14e   :  { %v3574_v9 = vpop.f32.mrb[6].mxu0 }
 0x14f   :  { %v3576_v11 = vpop.f32.mrb[7].mxu0 }
 0x152   :  { %v3549_v4 = vpop.eup %3160 }
 0x153   :  { %2108 = vmatmul.mubr.f32.vlgmr.msra.gmra.mrb[8].mxu0 %v3549_v4 }
 0x154   :  { %2785 = vmatpush3.bf16.msra.mxu0 %v3437_v10  ;;  %2177 = vmatprep.mubr.msk.f32.mxu0 %vm3293_vm0, %v3294_v2 }
 0x155   :  { %2786 = vmatprep.subr.bf16.mxu0 %v3292_v1 }
 0x158   :  { %2788 = vmatpush3.bf16.msra.mxu0 %v3446_v16 }
 0x159   :  { %2789 = vmatprep.subr.bf16.mxu0 %v3292_v1 }
 0x15c   :  { %2791 = vmatpush3.bf16.msra.mxu0 %v3456_v22 }
 0x15d   :  { %2792 = vmatprep.subr.bf16.mxu0 %v3292_v1 }
 0x160   :  { %2794 = vmatpush3.bf16.msra.mxu0 %v3466_v29 }
 0x161   :  { %2795 = vmatprep.subr.bf16.mxu0 %v3292_v1 }
 0x164   :  { %2797 = vmatpush3.bf16.msra.mxu0 %v3476_v35 }
 0x165   :  { %2798 = vmatprep.subr.bf16.mxu0 %v3292_v1 }
 0x168   :  { %2800 = vmatpush3.bf16.msra.mxu0 %v3486_v41 }
 0x169   :  { %2801 = vmatprep.subr.bf16.mxu0 %v3292_v1 }
 0x16c   :  { %2803 = vmatpush3.bf16.msra.mxu0 %v3496_v47 }
 0x16d   :  { %2804 = vmatprep.subr.bf16.mxu0 %v3292_v1 }
 0x170   :  { %2806 = vmatpush3.bf16.msra.mxu0 %v3500_v51 }
 0x171   :  { %2831 = vmatprep.subr.bf16.mxu0 %v3292_v1 }
 0x226   :  { %v380_v13 = vpop.f32.mrb[8].mxu0 }
 0x227   :  { %v384_v14 = vadd.f32 %v380_v13, %v208_v12  ;;  %v2109_v15 = vpop.f32.mrb[9].mxu0  ;;  %v848_v12 = vld [vmem:[#allocation9 + $0x38] sm:$0xff] }
 0x228   :  { %v3686_v13 = vpack.c.bf16 %v848_v12, %v847_v8  ;;  %v850_v15 = vld [vmem:[#allocation9 + $0x48] sm:$0xff] }
 0x229   :  { %3162 = vtanh.f32 %v384_v14  ;;  %v849_v14 = vld [vmem:[#allocation9 + $0x40] sm:$0xff] }
 0x233   :  { %v3579_v17 = vpop.eup %3162 }
 0x234   :  { %2143 = vmatmul.mubr.f32.vlgmr.msra.gmra.mrb[2].mxu1 %v3579_v17 }
 0x235   :  { %2809 = vmatpush3.bf16.msra.mxu1 %v3437_v10  ;;  %2212 = vmatprep.mubr.msk.f32.mxu1 %vm3293_vm0, %v3294_v2 }
 0x236   :  { %2810 = vmatprep.subr.bf16.mxu1 %v3292_v1 }
 0x239   :  { %2812 = vmatpush3.bf16.msra.mxu1 %v3446_v16 }
 0x23a   :  { %2813 = vmatprep.subr.bf16.mxu1 %v3292_v1 }
 0x23d   :  { %2815 = vmatpush3.bf16.msra.mxu1 %v3456_v22 }
 0x23e   :  { %2816 = vmatprep.subr.bf16.mxu1 %v3292_v1 }
 0x241   :  { %2818 = vmatpush3.bf16.msra.mxu1 %v3466_v29 }
 0x242   :  { %2819 = vmatprep.subr.bf16.mxu1 %v3292_v1 }
 0x245   :  { %2821 = vmatpush3.bf16.msra.mxu1 %v3476_v35 }
 0x246   :  { %2822 = vmatprep.subr.bf16.mxu1 %v3292_v1 }
 0x249   :  { %2824 = vmatpush3.bf16.msra.mxu1 %v3486_v41 }
 0x24a   :  { %2825 = vmatprep.subr.bf16.mxu1 %v3292_v1 }
 0x24d   :  { %2827 = vmatpush3.bf16.msra.mxu1 %v3496_v47 }
 0x24e   :  { %2828 = vmatprep.subr.bf16.mxu1 %v3292_v1 }
 0x251   :  { %2830 = vmatpush3.bf16.msra.mxu1 %v3500_v51 }
 0x252   :  { %2855 = vmatprep.subr.bf16.mxu1 %v3292_v1 }
 0x307   :  { %v453_v19 = vpop.f32.mrb[2].mxu1 }
 0x308   :  { %v457_v20 = vadd.f32 %v453_v19, %v213_v18  ;;  %v2144_v21 = vpop.f32.mrb[3].mxu1  ;;  %v851_v18 = vld [vmem:[#allocation9 + $0x50] sm:$0xff]  ;;  %v852_v19 = vld [vmem:[#allocation9 + $0x58] sm:$0xff] }
 0x309   :  { %v853_v21 = vld [vmem:[#allocation9 + $0x60] sm:$0xff] }
 0x30a   :  { %3164 = vtanh.f32 %v457_v20  ;;  %v3694_v20 = vpack.c.bf16 %v852_v19, %v851_v18  ;;  %v1556_v18 = vld [vmem:[%s3939_s7 + $0x18] sm:$0xff] }
 0x314   :  { %v3601_v23 = vpop.eup %3164 }
 0x315   :  { %2178 = vmatmul.mubr.f32.vlgmr.msra.gmra.mrb[10].mxu0 %v3601_v23 }
 0x316   :  { %2833 = vmatpush3.bf16.msra.mxu0 %v3437_v10  ;;  %2247 = vmatprep.mubr.msk.f32.mxu0 %vm3293_vm0, %v3294_v2 }
 0x317   :  { %2834 = vmatprep.subr.bf16.mxu0 %v3292_v1 }
 0x31a   :  { %2836 = vmatpush3.bf16.msra.mxu0 %v3446_v16 }
 0x31b   :  { %2837 = vmatprep.subr.bf16.mxu0 %v3292_v1 }
 0x31e   :  { %2839 = vmatpush3.bf16.msra.mxu0 %v3456_v22 }
 0x31f   :  { %2840 = vmatprep.subr.bf16.mxu0 %v3292_v1 }
 0x322   :  { %2842 = vmatpush3.bf16.msra.mxu0 %v3466_v29 }
 0x323   :  { %2843 = vmatprep.subr.bf16.mxu0 %v3292_v1 }
 0x326   :  { %2845 = vmatpush3.bf16.msra.mxu0 %v3476_v35 }
 0x327   :  { %2846 = vmatprep.subr.bf16.mxu0 %v3292_v1 }
 0x32a   :  { %2848 = vmatpush3.bf16.msra.mxu0 %v3486_v41 }
 0x32b   :  { %2849 = vmatprep.subr.bf16.mxu0 %v3292_v1 }
 0x32e   :  { %2851 = vmatpush3.bf16.msra.mxu0 %v3496_v47 }
 0x32f   :  { %2852 = vmatprep.subr.bf16.mxu0 %v3292_v1 }
 0x332   :  { %2854 = vmatpush3.bf16.msra.mxu0 %v3500_v51 }
 0x333   :  { %2879 = vmatprep.subr.bf16.mxu0 %v3292_v1 }
 0x3e8   :  { %v526_v25 = vpop.f32.mrb[10].mxu0 }
 0x3e9   :  { %v530_v26 = vadd.f32 %v526_v25, %v218_v24  ;;  %v2179_v27 = vpop.f32.mrb[11].mxu0  ;;  %v855_v25 = vld [vmem:[#allocation9 + $0x70] sm:$0xff] }
 0x3eb   :  { %3166 = vtanh.f32 %v530_v26  ;;  %v856_v26 = vld [vmem:[#allocation9 + $0x78] sm:$0xff] }
 0x3ec   :  { %v3702_v27 = vpack.c.bf16 %v856_v26, %v855_v25  ;;  %v1561_v26 = vld [vmem:[%s3939_s7 + $0x40] sm:$0xff] }
 0x3f5   :  { %v3623_v28 = vpop.eup %3166 }
 0x3f6   :  { %2213 = vmatmul.mubr.f32.vlgmr.msra.gmra.mrb[4].mxu1 %v3623_v28 }
 0x3f7   :  { %2857 = vmatpush3.bf16.msra.mxu1 %v3437_v10  ;;  %2282 = vmatprep.mubr.msk.f32.mxu1 %vm3293_vm0, %v3294_v2 }
 0x3f8   :  { %2858 = vmatprep.subr.bf16.mxu1 %v3292_v1 }
 0x3fb   :  { %2860 = vmatpush3.bf16.msra.mxu1 %v3446_v16 }
 0x3fc   :  { %2861 = vmatprep.subr.bf16.mxu1 %v3292_v1 }
 0x3ff   :  { %2863 = vmatpush3.bf16.msra.mxu1 %v3456_v22 }
 0x400   :  { %2864 = vmatprep.subr.bf16.mxu1 %v3292_v1 }
 0x403   :  { %2866 = vmatpush3.bf16.msra.mxu1 %v3466_v29 }
 0x404   :  { %2867 = vmatprep.subr.bf16.mxu1 %v3292_v1 }
 0x407   :  { %2869 = vmatpush3.bf16.msra.mxu1 %v3476_v35 }
 0x408   :  { %2870 = vmatprep.subr.bf16.mxu1 %v3292_v1 }
 0x40b   :  { %2872 = vmatpush3.bf16.msra.mxu1 %v3486_v41 }
 0x40c   :  { %2873 = vmatprep.subr.bf16.mxu1 %v3292_v1 }
 0x40f   :  { %2875 = vmatpush3.bf16.msra.mxu1 %v3496_v47 }
 0x410   :  { %2876 = vmatprep.subr.bf16.mxu1 %v3292_v1 }
 0x413   :  { %2878 = vmatpush3.bf16.msra.mxu1 %v3500_v51 }
 0x4c9   :  { %v599_v31 = vpop.f32.mrb[4].mxu1 }
 0x4ca   :  { %v603_v32 = vadd.f32 %v599_v31, %v223_v30  ;;  %v2214_v33 = vpop.f32.mrb[5].mxu1 }
 0x4cc   :  { %3168 = vtanh.f32 %v603_v32 }
 0x4d6   :  { %v3645_v34 = vpop.eup %3168 }
 0x4d7   :  { %2248 = vmatmul.mubr.f32.vlgmr.msra.gmra.mrb[12].mxu0 %v3645_v34 }
 0x4d8   :  { %2881 = vmatpush3.bf16.msra.mxu0 %v3437_v10  ;;  %2317 = vmatprep.mubr.msk.f32.mxu0 %vm3293_vm0, %v3294_v2  ;;  %v825_v10 = vld [vmem:[#allocation8] sm:$0xff] }
 0x4d9   :  { %2882 = vmatprep.subr.bf16.mxu0 %v3292_v1 }
 0x4dc   :  { %2884 = vmatpush3.bf16.msra.mxu0 %v3446_v16  ;;  %v826_v16 = vld [vmem:[#allocation8 + $0x8] sm:$0xff] }
 0x4dd   :  { %2885 = vmatprep.subr.bf16.mxu0 %v3292_v1 }
 0x4e0   :  { %2887 = vmatpush3.bf16.msra.mxu0 %v3456_v22  ;;  %v2903_v22 = vpack.c.bf16 %v826_v16, %v825_v10 }
 0x4e1   :  { %2888 = vmatprep.subr.bf16.mxu0 %v3292_v1 }
 0x4e2   :  { %2904 = vmatprep.subr.bf16.mxu1 %v2903_v22 }
 0x4e4   :  { %2890 = vmatpush3.bf16.msra.mxu0 %v3466_v29  ;;  %v228_v29 = vadd.f32 %v3570_v7, %v3546_v59  ;;  %v3682_v7 = vpack.c.bf16 %v846_v6, %v845_v5 }
 0x4e5   :  { %2891 = vmatprep.subr.bf16.mxu0 %v3292_v1 }
 0x4e8   :  { %2893 = vmatpush3.bf16.msra.mxu0 %v3476_v35 }
 0x4e9   :  { %2894 = vmatprep.subr.bf16.mxu0 %v3292_v1 }
 0x4ec   :  { %2896 = vmatpush3.bf16.msra.mxu0 %v3486_v41 }
 0x4ed   :  { %2897 = vmatprep.subr.bf16.mxu0 %v3292_v1 }
 0x4f0   :  { %2899 = vmatpush3.bf16.msra.mxu0 %v3496_v47  ;;  %v2915_v47 = vpack.c.bf16 %v832_v46, %v831_v45 }
 0x4f1   :  { %2900 = vmatprep.subr.bf16.mxu0 %v3292_v1 }
 0x4f4   :  { %2902 = vmatpush3.bf16.msra.mxu0 %v3500_v51  ;;  %v835_v51 = vld [vmem:[#allocation8 + $0x50] sm:$0xff] }
 0x4f5   :  { %2935 = vmatprep.subr.bf16.mxu0 %v3292_v1  ;;  %v2923_v53 = vpack.c.bf16 %v836_v52, %v835_v51 }
 0x5aa   :  { %v672_v35 = vpop.f32.mrb[12].mxu0 }
 0x5ab   :  { %v676_v36 = vadd.f32 %v672_v35, %v228_v29  ;;  %v2249_v37 = vpop.f32.mrb[13].mxu0  ;;  %v238_v35 = vadd.f32 %v3574_v9, %v3546_v59 }
 0x5ad   :  { %3170 = vtanh.f32 %v676_v36 }
 0x5b7   :  { %v3171_v41 = vpop.eup %3170 }
 0x5b8   :  { %2283 = vmatmul.mubr.f32.vlgmr.msra.gmra.mrb[6].mxu1 %v3171_v41 }
 0x5b9   :  { %2906 = vmatpush3.bf16.msra.mxu1 %v2903_v22  ;;  %2352 = vmatprep.mubr.f32.mxu1 %v3549_v4  ;;  %v3678_v4 = vpack.c.bf16 %v844_v3, %v843_v0 }
 0x5ba   :  { %2908 = vmatprep.subr.bf16.mxu1 %v2907_v40 }
 0x5bd   :  { %2910 = vmatpush3.bf16.msra.mxu1 %v2907_v40  ;;  %v3762_v40 = vld [vmem:[%s3938_s6] ss:$0 sm:$0xff] }
 0x5be   :  { %2912 = vmatprep.subr.bf16.mxu1 %v2911_v44 }
 0x5c1   :  { %2914 = vmatpush3.bf16.msra.mxu1 %v2911_v44 }
 0x5c2   :  { %2916 = vmatprep.subr.bf16.mxu1 %v2915_v47 }
 0x5c5   :  { %2918 = vmatpush3.bf16.msra.mxu1 %v2915_v47 }
 0x5c6   :  { %2920 = vmatprep.subr.bf16.mxu1 %v2919_v50 }
 0x5c9   :  { %2922 = vmatpush3.bf16.msra.mxu1 %v2919_v50 }
 0x5ca   :  { %2924 = vmatprep.subr.bf16.mxu1 %v2923_v53 }
 0x5cd   :  { %2926 = vmatpush3.bf16.msra.mxu1 %v2923_v53 }
 0x5ce   :  { %2928 = vmatprep.subr.bf16.mxu1 %v2927_v56 }
 0x5d1   :  { %2930 = vmatpush3.bf16.msra.mxu1 %v2927_v56 }
 0x5d2   :  { %2932 = vmatprep.subr.bf16.mxu1 %v2931_v60 }
 0x5d5   :  { %2934 = vmatpush3.bf16.msra.mxu1 %v2931_v60 }
 0x5d6   :  { %2959 = vmatprep.subr.bf16.mxu1 %v3292_v1 }
 0x5d8   :  { %2353 = vmatmul.mubr.f32.vlgmr.msra.gmra.mrb[8].mxu1 %v3579_v17  ;;  %v3690_v17 = vpack.c.bf16 %v850_v15, %v849_v14  ;;  %v1554_v14 = vld [vmem:[%s3939_s7 + $0x8] sm:$0xff]  ;;  %v1555_v15 = vld [vmem:[%s3939_s7 + $0x10] sm:$0xff] }
 0x5d9   :  { %2355 = vmatprep.mubr.f32.mxu1 %v3601_v23  ;;  %2961 = vmatpush3.bf16.msra.mxu1 %v3674_v63  ;;  %v854_v23 = vld [vmem:[#allocation9 + $0x68] sm:$0xff]  ;;  %v3131_v19 = vpack.c.bf16 %v1556_v18, %v1555_v15 }
 0x5da   :  { %2962 = vmatprep.subr.bf16.mxu1 %v3292_v1  ;;  %v3698_v24 = vpack.c.bf16 %v854_v23, %v853_v21  ;;  %v1559_v23 = vld [vmem:[%s3939_s7 + $0x30] sm:$0xff] }
 0x5dc   :  { %2356 = vmatmul.mubr.f32.gmra.mrb[10].mxu1 %v3623_v28  ;;  %v233_v28 = vadd.f32 %v3546_v59, %v3576_v11 }
 0x5dd   :  { %2358 = vmatprep.mubr.f32.mxu1 %v3645_v34  ;;  %2964 = vmatpush3.bf16.msra.mxu1 %v3678_v4 }
 0x5de   :  { %2965 = vmatprep.subr.bf16.mxu1 %v3292_v1 }
 0x5e0   :  { %2359 = vmatmul.mubr.f32.gmra.mrb[12].mxu1 %v3171_v41 }
 0x5e1   :  { %2967 = vmatpush3.bf16.msra.mxu1 %v3682_v7 }
 0x5e2   :  { %2968 = vmatprep.subr.bf16.mxu1 %v3292_v1 }
 0x5e5   :  { %2970 = vmatpush3.bf16.msra.mxu1 %v3686_v13 }
 0x5e6   :  { %2971 = vmatprep.subr.bf16.mxu1 %v3292_v1 }
 0x5e9   :  { %2973 = vmatpush3.bf16.msra.mxu1 %v3690_v17 }
 0x5ea   :  { %2974 = vmatprep.subr.bf16.mxu1 %v3292_v1 }
 0x5ed   :  { %2976 = vmatpush3.bf16.msra.mxu1 %v3694_v20 }
 0x5ee   :  { %2977 = vmatprep.subr.bf16.mxu1 %v3292_v1 }
 0x5f1   :  { %2979 = vmatpush3.bf16.msra.mxu1 %v3698_v24 }
 0x5f2   :  { %2980 = vmatprep.subr.bf16.mxu1 %v3292_v1 }
 0x5f5   :  { %2982 = vmatpush3.bf16.msra.mxu1 %v3702_v27 }
 0x5f6   :  { %3007 = vmatprep.subr.bf16.mxu1 %v3292_v1 }
 0x68b   :  { %v745_v30 = vpop.f32.mrb[6].mxu1 }
 0x68c   :  { %v749_v31 = vadd.f32 %v745_v30, %v233_v28  ;;  %v2284_v32 = vpop.f32.mrb[7].mxu1 }
 0x68e   :  { %3172 = vtanh.f32 %v749_v31 }
 0x698   :  { %v3173_v33 = vpop.eup %3172 }
 0x699   :  { %2318 = vmatmul.mubr.f32.vlgmr.msra.gmra.mrb[14].mxu0 %v3173_v33  ;;  %2361 = vmatprep.mubr.f32.mxu1 %v3173_v33 }
 0x69a   :  { %2937 = vmatpush3.bf16.msra.mxu0 %v3674_v63  ;;  %2396 = vmatprep.mubr.msk.f32.mxu0 %vm3293_vm0, %v3294_v2 }
 0x69b   :  { %2938 = vmatprep.subr.bf16.mxu0 %v3292_v1 }
 0x69e   :  { %2940 = vmatpush3.bf16.msra.mxu0 %v3678_v4 }
 0x69f   :  { %2941 = vmatprep.subr.bf16.mxu0 %v3292_v1 }
 0x6a2   :  { %2943 = vmatpush3.bf16.msra.mxu0 %v3682_v7 }
 0x6a3   :  { %2944 = vmatprep.subr.bf16.mxu0 %v3292_v1 }
 0x6a6   :  { %2946 = vmatpush3.bf16.msra.mxu0 %v3686_v13 }
 0x6a7   :  { %2947 = vmatprep.subr.bf16.mxu0 %v3292_v1 }
 0x6aa   :  { %2949 = vmatpush3.bf16.msra.mxu0 %v3690_v17 }
 0x6ab   :  { %v3719_v11 = vpop.f32.mrb[8].mxu1  ;;  %2950 = vmatprep.subr.bf16.mxu0 %v3292_v1 }
 0x6ac   :  { %v938_v34 = vpop.f32.mrb[9].mxu1  ;;  %v944_v46 = vadd.f32 %v3719_v11, %v3762_v40 }
 0x6ad   :  { %v939_v41 = vadd.f32 %v3762_v40, %v938_v34  ;;  %v1563_v34 = vld [vmem:[%s3939_s7 + $0x50] sm:$0xff] }
 0x6ae   :  { %2952 = vmatpush3.bf16.msra.mxu0 %v3694_v20 }
 0x6af   :  { %v3723_v10 = vpop.f32.mrb[10].mxu1  ;;  %2953 = vmatprep.subr.bf16.mxu0 %v3292_v1 }
 0x6b0   :  { %v3726_v16 = vpop.f32.mrb[11].mxu1  ;;  %v954_v56 = vadd.f32 %v3723_v10, %v3762_v40  ;;  %v1564_v10 = vld [vmem:[%s3939_s7 + $0x58] sm:$0xff] }
 0x6b1   :  { %v949_v51 = vadd.f32 %v3762_v40, %v3726_v16  ;;  %v3143_v16 = vpack.c.bf16 %v1564_v10, %v1563_v34 }
 0x6b2   :  { %2955 = vmatpush3.bf16.msra.mxu0 %v3698_v24 }
 0x6b3   :  { %v3729_v22 = vpop.f32.mrb[12].mxu1  ;;  %2956 = vmatprep.subr.bf16.mxu0 %v3292_v1 }
 0x6b4   :  { %v3732_v29 = vpop.f32.mrb[13].mxu1 }
 0x6b5   :  { %v959_v62 = vadd.f32 %v3762_v40, %v3732_v29  ;;  %v1566_v29 = vld [vmem:[%s3939_s7 + $0x68] sm:$0xff] }
 0x6b6   :  { %2958 = vmatpush3.bf16.msra.mxu0 %v3702_v27 }
 0x6b7   :  { %2983 = vmatprep.subr.bf16.mxu0 %v3292_v1 }
 0x6b9   :  { %2397 = vmatmul.mubr.f32.vlgmr.msra.gmra.mrb[16].mxu0 %v3294_v2 }
 0x6ba   :  { %2985 = vmatpush3.bf16.msra.mxu0 %v3674_v63  ;;  %2466 = vmatprep.mubr.msk.f32.mxu0 %vm3293_vm0, %v3294_v2 }
 0x6bb   :  { %2986 = vmatprep.subr.bf16.mxu0 %v3292_v1 }
 0x6be   :  { %2988 = vmatpush3.bf16.msra.mxu0 %v3678_v4 }
 0x6bf   :  { %2989 = vmatprep.subr.bf16.mxu0 %v3292_v1 }
 0x6c2   :  { %2991 = vmatpush3.bf16.msra.mxu0 %v3682_v7 }
 0x6c3   :  { %2992 = vmatprep.subr.bf16.mxu0 %v3292_v1 }
 0x6c6   :  { %2994 = vmatpush3.bf16.msra.mxu0 %v3686_v13 }
 0x6c7   :  { %2995 = vmatprep.subr.bf16.mxu0 %v3292_v1 }
 0x6ca   :  { %2997 = vmatpush3.bf16.msra.mxu0 %v3690_v17 }
 0x6cb   :  { %2998 = vmatprep.subr.bf16.mxu0 %v3292_v1 }
 0x6ce   :  { %3000 = vmatpush3.bf16.msra.mxu0 %v3694_v20 }
 0x6cf   :  { %3001 = vmatprep.subr.bf16.mxu0 %v3292_v1 }
 0x6d2   :  { %3003 = vmatpush3.bf16.msra.mxu0 %v3698_v24 }
 0x6d3   :  { %3004 = vmatprep.subr.bf16.mxu0 %v3292_v1 }
 0x6d6   :  { %3006 = vmatpush3.bf16.msra.mxu0 %v3702_v27 }
 0x6d7   :  { %3031 = vmatprep.subr.bf16.mxu0 %v3292_v1 }
 0x76c   :  { %v818_v36 = vpop.f32.mrb[14].mxu0 }
 0x76d   :  { %v822_v37 = vadd.f32 %v818_v36, %v238_v35  ;;  %v2319_v38 = vpop.f32.mrb[15].mxu0  ;;  %v1567_v36 = vld [vmem:[%s3939_s7 + $0x70] sm:$0xff] }
 0x76f   :  { %3174 = vtanh.f32 %v822_v37  ;;  %v1568_v37 = vld [vmem:[%s3939_s7 + $0x78] sm:$0xff] }
 0x770   :  { %v3149_v38 = vpack.c.bf16 %v1568_v37, %v1567_v36 }
 0x779   :  { %v3175_v39 = vpop.eup %3174 }
 0x77a   :  { %2362 = vmatmul.mubr.f32.gmra.mrb[14].mxu1 %v3175_v39 }
 0x77b   :  { %2431 = vmatprep.mubr.msk.f32.mxu1 %vm3293_vm0, %v3294_v2 }
 0x78c   :  { %v1043_v42 = vpop.f32.mrb[16].mxu0 }
 0x78d   :  { %v1047_v43 = vadd.f32 %v1043_v42, %v939_v41  ;;  %v2398_v44 = vpop.f32.mrb[17].mxu0 }
 0x78f   :  { %3176 = vtanh.f32 %v1047_v43 }
 0x799   :  { %v3177_v59 = vpop.eup %3176 }
 0x79a   :  { %2432 = vmatmul.mubr.f32.vlgmr.msra.gmra.mrb[16].mxu1 %v3177_v59  ;;  %v1658_v59 = vld [vmem:[#allocation3] ss:$0 sm:$0xff] }
 0x79b   :  { %3009 = vmatpush3.bf16.msra.mxu1 %v3674_v63  ;;  %2501 = vmatprep.mubr.msk.f32.mxu1 %vm3293_vm0, %v3294_v2 }
 0x79c   :  { %3010 = vmatprep.subr.bf16.mxu1 %v3292_v1 }
 0x79f   :  { %3012 = vmatpush3.bf16.msra.mxu1 %v3678_v4 }
 0x7a0   :  { %3013 = vmatprep.subr.bf16.mxu1 %v3292_v1 }
 0x7a3   :  { %3015 = vmatpush3.bf16.msra.mxu1 %v3682_v7 }
 0x7a4   :  { %3016 = vmatprep.subr.bf16.mxu1 %v3292_v1 }
 0x7a7   :  { %3018 = vmatpush3.bf16.msra.mxu1 %v3686_v13 }
 0x7a8   :  { %3019 = vmatprep.subr.bf16.mxu1 %v3292_v1 }
 0x7ab   :  { %3021 = vmatpush3.bf16.msra.mxu1 %v3690_v17 }
 0x7ac   :  { %3022 = vmatprep.subr.bf16.mxu1 %v3292_v1 }
 0x7af   :  { %3024 = vmatpush3.bf16.msra.mxu1 %v3694_v20 }
 0x7b0   :  { %3025 = vmatprep.subr.bf16.mxu1 %v3292_v1 }
 0x7b3   :  { %3027 = vmatpush3.bf16.msra.mxu1 %v3698_v24 }
 0x7b4   :  { %3028 = vmatprep.subr.bf16.mxu1 %v3292_v1 }
 0x7b7   :  { %3030 = vmatpush3.bf16.msra.mxu1 %v3702_v27 }
 0x7b8   :  { %3055 = vmatprep.subr.bf16.mxu1 %v3292_v1 }
 0x84d   :  { %v3783_v9 = vpop.f32.mrb[14].mxu1 }
 0x84e   :  { %v3785_v45 = vpop.f32.mrb[15].mxu1  ;;  %v974_v39 = vadd.f32 %v3783_v9, %v3762_v40 }
 0x84f   :  { %v969_v30 = vadd.f32 %v3762_v40, %v3785_v45 }
 0x86d   :  { %v1115_v47 = vpop.f32.mrb[16].mxu1 }
 0x86e   :  { %v1119_v48 = vadd.f32 %v1115_v47, %v944_v46  ;;  %v2433_v49 = vpop.f32.mrb[17].mxu1 }
 0x870   :  { %3178 = vtanh.f32 %v1119_v48 }
 0x87a   :  { %v3179_v50 = vpop.eup %3178 }
 0x87b   :  { %2467 = vmatmul.mubr.f32.vlgmr.msra.gmra.mrb[18].mxu0 %v3179_v50 }
 0x87c   :  { %3033 = vmatpush3.bf16.msra.mxu0 %v3674_v63  ;;  %2536 = vmatprep.mubr.msk.f32.mxu0 %vm3293_vm0, %v3294_v2 }
 0x87d   :  { %3034 = vmatprep.subr.bf16.mxu0 %v3292_v1 }
 0x880   :  { %3036 = vmatpush3.bf16.msra.mxu0 %v3678_v4 }
 0x881   :  { %3037 = vmatprep.subr.bf16.mxu0 %v3292_v1 }
 0x884   :  { %3039 = vmatpush3.bf16.msra.mxu0 %v3682_v7 }
 0x885   :  { %3040 = vmatprep.subr.bf16.mxu0 %v3292_v1 }
 0x888   :  { %3042 = vmatpush3.bf16.msra.mxu0 %v3686_v13 }
 0x889   :  { %3043 = vmatprep.subr.bf16.mxu0 %v3292_v1 }
 0x88c   :  { %3045 = vmatpush3.bf16.msra.mxu0 %v3690_v17 }
 0x88d   :  { %3046 = vmatprep.subr.bf16.mxu0 %v3292_v1 }
 0x890   :  { %3048 = vmatpush3.bf16.msra.mxu0 %v3694_v20 }
 0x891   :  { %3049 = vmatprep.subr.bf16.mxu0 %v3292_v1 }
 0x894   :  { %3051 = vmatpush3.bf16.msra.mxu0 %v3698_v24 }
 0x895   :  { %3052 = vmatprep.subr.bf16.mxu0 %v3292_v1 }
 0x898   :  { %3054 = vmatpush3.bf16.msra.mxu0 %v3702_v27 }
 0x899   :  { %3079 = vmatprep.subr.bf16.mxu0 %v3292_v1 }
 0x94e   :  { %v1187_v52 = vpop.f32.mrb[18].mxu0 }
 0x94f   :  { %v1191_v53 = vadd.f32 %v1187_v52, %v949_v51  ;;  %v2468_v54 = vpop.f32.mrb[19].mxu0 }
 0x951   :  { %3180 = vtanh.f32 %v1191_v53 }
 0x95b   :  { %v3181_v55 = vpop.eup %3180 }
 0x95c   :  { %2502 = vmatmul.mubr.f32.vlgmr.msra.gmra.mrb[18].mxu1 %v3181_v55 }
 0x95d   :  { %3057 = vmatpush3.bf16.msra.mxu1 %v3674_v63  ;;  %2571 = vmatprep.mubr.msk.f32.mxu1 %vm3293_vm0, %v3294_v2 }
 0x95e   :  { %3058 = vmatprep.subr.bf16.mxu1 %v3292_v1 }
 0x961   :  { %3060 = vmatpush3.bf16.msra.mxu1 %v3678_v4 }
 0x962   :  { %3061 = vmatprep.subr.bf16.mxu1 %v3292_v1 }
 0x965   :  { %3063 = vmatpush3.bf16.msra.mxu1 %v3682_v7 }
 0x966   :  { %3064 = vmatprep.subr.bf16.mxu1 %v3292_v1 }
 0x969   :  { %3066 = vmatpush3.bf16.msra.mxu1 %v3686_v13 }
 0x96a   :  { %3067 = vmatprep.subr.bf16.mxu1 %v3292_v1 }
 0x96d   :  { %3069 = vmatpush3.bf16.msra.mxu1 %v3690_v17 }
 0x96e   :  { %3070 = vmatprep.subr.bf16.mxu1 %v3292_v1 }
 0x971   :  { %3072 = vmatpush3.bf16.msra.mxu1 %v3694_v20 }
 0x972   :  { %3073 = vmatprep.subr.bf16.mxu1 %v3292_v1 }
 0x975   :  { %3075 = vmatpush3.bf16.msra.mxu1 %v3698_v24 }
 0x976   :  { %3076 = vmatprep.subr.bf16.mxu1 %v3292_v1 }
 0x979   :  { %3078 = vmatpush3.bf16.msra.mxu1 %v3702_v27 }
 0x97a   :  { %3103 = vmatprep.subr.bf16.mxu1 %v3292_v1 }
 0xa2f   :  { %v1259_v57 = vpop.f32.mrb[18].mxu1 }
 0xa30   :  { %v1263_v58 = vadd.f32 %v1259_v57, %v954_v56  ;;  %v2503_v60 = vpop.f32.mrb[19].mxu1 }
 0xa32   :  { %3182 = vtanh.f32 %v1263_v58 }
 0xa3c   :  { %v3183_v61 = vpop.eup %3182 }
 0xa3d   :  { %2537 = vmatmul.mubr.f32.vlgmr.msra.gmra.mrb[20].mxu0 %v3183_v61 }
 0xa3e   :  { %3081 = vmatpush3.bf16.msra.mxu0 %v3674_v63  ;;  %2606 = vmatprep.mubr.msk.f32.mxu0 %vm3293_vm0, %v3294_v2 }
 0xa3f   :  { %3082 = vmatprep.subr.bf16.mxu0 %v3292_v1 }
 0xa42   :  { %3084 = vmatpush3.bf16.msra.mxu0 %v3678_v4 }
 0xa43   :  { %3085 = vmatprep.subr.bf16.mxu0 %v3292_v1 }
 0xa46   :  { %3087 = vmatpush3.bf16.msra.mxu0 %v3682_v7 }
 0xa47   :  { %3088 = vmatprep.subr.bf16.mxu0 %v3292_v1 }
 0xa4a   :  { %3090 = vmatpush3.bf16.msra.mxu0 %v3686_v13 }
 0xa4b   :  { %3091 = vmatprep.subr.bf16.mxu0 %v3292_v1 }
 0xa4e   :  { %3093 = vmatpush3.bf16.msra.mxu0 %v3690_v17 }
 0xa4f   :  { %3094 = vmatprep.subr.bf16.mxu0 %v3292_v1 }
 0xa52   :  { %3096 = vmatpush3.bf16.msra.mxu0 %v3694_v20 }
 0xa53   :  { %3097 = vmatprep.subr.bf16.mxu0 %v3292_v1 }
 0xa56   :  { %3099 = vmatpush3.bf16.msra.mxu0 %v3698_v24 }
 0xa57   :  { %3100 = vmatprep.subr.bf16.mxu0 %v3292_v1 }
 0xa5a   :  { %3102 = vmatpush3.bf16.msra.mxu0 %v3702_v27 }
 0xa5b   :  { %3127 = vmatprep.subr.bf16.mxu0 %v3292_v1 }
 0xb10   :  { %v1331_v0 = vpop.f32.mrb[20].mxu0 }
 0xb11   :  { %v1335_v3 = vadd.f32 %v1331_v0, %v959_v62  ;;  %v2538_v5 = vpop.f32.mrb[21].mxu0 }
 0xb13   :  { %3184 = vtanh.f32 %v1335_v3 }
 0xb1d   :  { %v3185_v6 = vpop.eup %3184 }
 0xb1e   :  { %2572 = vmatmul.mubr.f32.vlgmr.msra.gmra.mrb[20].mxu1 %v3185_v6 }
 0xb1f   :  { %3105 = vmatpush3.bf16.msra.mxu1 %v3674_v63  ;;  %2641 = vmatprep.mubr.msk.f32.mxu1 %vm3293_vm0, %v3294_v2  ;;  %v964_v63 = vadd.f32 %v3729_v22, %v3762_v40  ;;  %v1565_v22 = vld [vmem:[%s3939_s7 + $0x60] sm:$0xff] }
 0xb20   :  { %3106 = vmatprep.subr.bf16.mxu1 %v3292_v1  ;;  %v3146_v35 = vpack.c.bf16 %v1566_v29, %v1565_v22 }
 0xb23   :  { %3108 = vmatpush3.bf16.msra.mxu1 %v3678_v4 }
 0xb24   :  { %3109 = vmatprep.subr.bf16.mxu1 %v3292_v1 }
 0xb27   :  { %3111 = vmatpush3.bf16.msra.mxu1 %v3682_v7 }
 0xb28   :  { %3112 = vmatprep.subr.bf16.mxu1 %v3292_v1 }
 0xb2b   :  { %3114 = vmatpush3.bf16.msra.mxu1 %v3686_v13  ;;  %v1553_v13 = vld [vmem:[%s3939_s7] sm:$0xff] }
 0xb2c   :  { %3115 = vmatprep.subr.bf16.mxu1 %v3292_v1 }
 0xb2f   :  { %3117 = vmatpush3.bf16.msra.mxu1 %v3690_v17  ;;  %v3128_v17 = vpack.c.bf16 %v1554_v14, %v1553_v13 }
 0xb30   :  { %3118 = vmatprep.subr.bf16.mxu1 %v3292_v1 }
 0xb33   :  { %3120 = vmatpush3.bf16.msra.mxu1 %v3694_v20  ;;  %v1558_v20 = vld [vmem:[%s3939_s7 + $0x28] sm:$0xff] }
 0xb34   :  { %3121 = vmatprep.subr.bf16.mxu1 %v3292_v1 }
 0xb37   :  { %3123 = vmatpush3.bf16.msra.mxu1 %v3698_v24  ;;  %v1560_v24 = vld [vmem:[%s3939_s7 + $0x38] sm:$0xff] }
 0xb38   :  { %3124 = vmatprep.subr.bf16.mxu1 %v3292_v1  ;;  %v3137_v25 = vpack.c.bf16 %v1560_v24, %v1559_v23 }
 0xb3b   :  { %3126 = vmatpush3.bf16.msra.mxu1 %v3702_v27  ;;  %v1562_v27 = vld [vmem:[%s3939_s7 + $0x48] sm:$0xff] }
 0xb3c   :  { %v3140_v28 = vpack.c.bf16 %v1562_v27, %v1561_v26 }
 0xbf1   :  { %v1403_v4 = vpop.f32.mrb[20].mxu1 }
 0xbf2   :  { %v1407_v7 = vadd.f32 %v1403_v4, %v964_v63  ;;  %v2573_v8 = vpop.f32.mrb[21].mxu1 }
 0xbf4   :  { %3186 = vtanh.f32 %v1407_v7 }
 0xbfe   :  { %v3187_v12 = vpop.eup %3186 }
 0xbff   :  { %2607 = vmatmul.mubr.f32.vlgmr.msra.gmra.mrb[22].mxu0 %v3187_v12 }
 0xc00   :  { %2676 = vmatprep.mubr.msk.f32.mxu0 %vm3293_vm0, %v3294_v2  ;;  %3129 = vmatpush3.bf16.msra.mxu0 %v3128_v17  ;;  %v1557_v2 = vld [vmem:[%s3939_s7 + $0x20] sm:$0xff] }
 0xc01   :  { %3130 = vmatprep.subr.bf16.mxu0 %v3292_v1  ;;  %v3134_v21 = vpack.c.bf16 %v1558_v20, %v1557_v2 }
 0xc04   :  { %3132 = vmatpush3.bf16.msra.mxu0 %v3131_v19 }
 0xc05   :  { %3133 = vmatprep.subr.bf16.mxu0 %v3292_v1 }
 0xc08   :  { %3135 = vmatpush3.bf16.msra.mxu0 %v3134_v21 }
 0xc09   :  { %3136 = vmatprep.subr.bf16.mxu0 %v3292_v1 }
 0xc0c   :  { %3138 = vmatpush3.bf16.msra.mxu0 %v3137_v25 }
 0xc0d   :  { %3139 = vmatprep.subr.bf16.mxu0 %v3292_v1 }
 0xc10   :  { %3141 = vmatpush3.bf16.msra.mxu0 %v3140_v28 }
 0xc11   :  { %3142 = vmatprep.subr.bf16.mxu0 %v3292_v1 }
 0xc14   :  { %3144 = vmatpush3.bf16.msra.mxu0 %v3143_v16 }
 0xc15   :  { %3145 = vmatprep.subr.bf16.mxu0 %v3292_v1 }
 0xc18   :  { %3147 = vmatpush3.bf16.msra.mxu0 %v3146_v35 }
 0xc19   :  { %3148 = vmatprep.subr.bf16.mxu0 %v3292_v1 }
 0xc1c   :  { %3150 = vmatpush3.bf16.msra.mxu0 %v3149_v38 }
 0xcd2   :  { %v1475_v31 = vpop.f32.mrb[22].mxu0 }
 0xcd3   :  { %v1479_v32 = vadd.f32 %v1475_v31, %v969_v30  ;;  %v2608_v33 = vpop.f32.mrb[23].mxu0 }
 0xcd5   :  { %3188 = vtanh.f32 %v1479_v32 }
 0xcdf   :  { %v3189_v11 = vpop.eup %3188 }
 0xce0   :  { %2642 = vmatmul.mubr.f32.vlgmr.msra.gmra.mrb[22].mxu1 %v3189_v11 }
 0xdb3   :  { %v1547_v41 = vpop.f32.mrb[22].mxu1 }
 0xdb4   :  { %v1551_v42 = vadd.f32 %v1547_v41, %v974_v39  ;;  %v2643_v43 = vpop.f32.mrb[23].mxu1 }
 0xdb6   :  { %3190 = vtanh.f32 %v1551_v42 }
 0xdc0   :  { %v3191_v44 = vpop.eup %3190 }
 0xdc1   :  { %2677 = vmatmul.mubr.f32.vlgmr.msra.gmra.mrb[24].mxu0 %v3191_v44 }
 0xe94   :  { %v1642_v45 = vpop.f32.mrb[24].mxu0 }
 0xe95   :  { %v1643_v46 = vadd.f32 %v1658_v59, %v1642_v45  ;;  %v2678_v47 = vpop.f32.mrb[25].mxu0 }
 0xe97   :  { %v1646_v48 = vmax.f32 %v1643_v46, 0.0 }
 0xe99   :  { %1648 = vst.msk [vmem:[%s3941_s9] sm:$0xff] %vm1647_vm1, %v1646_v48 }
 0xe9a   :  { %1653 = vsyncpa [#allocation5], 1 }
 0xe9b   :  { %1654 = vsyncpa [#allocation7], 1 }
 0xe9c   :  { %1655 = vsyncpa [#allocation10], 1 }

</bundles_post_ra>
